<compile_context>
chip_gen: v6e
topology: v6e:2x2x1
jax: 0.10.0
libtpu: 0.0.40
codegen_flags: <defaults>
</compile_context>

<pallas_src>
import math

import jax
import jax.numpy as jnp
from jax.experimental import pallas as pl
from jax.experimental.pallas import tpu as pltpu

NUM_FEATURES = 192       # out_features of nn.Linear(1, 192)
_MAX_BATCH_TILE = 2048   # VALU-bound kernel; bigger tiles don't help


def _rff_kernel(t_ref, wp_ref, o_ref):
    # t_ref:  (TB, 1)  f32   timestep column
    # wp_ref: (2, 2F)  f32   row 0 = [w, w], row 1 = [0.., pi/2..]
    # o_ref:  (TB, 2F) out_dtype
    w2 = wp_ref[0:1, :]
    phase = wp_ref[1:2, :]
    # Outer product via VPU broadcast, single lane-dense sin, unmasked stores.
    o_ref[...] = jnp.sin(t_ref[...] * w2 + phase).astype(o_ref.dtype)


def random_fourier_features(
    t,
    weight_t,
    *,
    batch_tile=_MAX_BATCH_TILE,
    out_dtype=jnp.float32,
    fused_small_batch=0,
):
    """RandomFourierFeatures forward.

    t:        (B, 1) array, any float dtype (cast to f32, matching t.float()).
    weight_t: (1, 192) or PyTorch-native (192, 1) frozen Linear weight.
    Returns   (B, 384) out_dtype == cat([sin(t @ W^T), cos(t @ W^T)], -1).
    """
    t = jnp.asarray(t, dtype=jnp.float32)
    weight_t = jnp.asarray(weight_t, dtype=jnp.float32)

    # Accept both (1, F) and PyTorch's native (F, 1) layouts.
    if weight_t.ndim == 2 and weight_t.shape[0] != 1 and weight_t.shape[1] == 1:
        weight_t = weight_t.T
    assert weight_t.ndim == 2 and weight_t.shape[0] == 1, (
        f"weight_t must be (1, F) or (F, 1), got {weight_t.shape}")
    assert t.ndim == 2 and t.shape[1] == 1, f"t must be (B, 1), got {t.shape}"

    b = t.shape[0]
    f = weight_t.shape[1]
    two_f = 2 * f

    # Pre-fold the frozen parameter into one resident (2, 2F) slab:
    #   row 0: doubled weight, row 1: phase offset for the cos half.
    w2 = jnp.concatenate([weight_t, weight_t], axis=-1)                 # (1, 2F)
    phase = jnp.concatenate(
        [jnp.zeros((1, f), jnp.float32),
         jnp.full((1, f), jnp.pi / 2.0, jnp.float32)],
        axis=-1,
    )                                                                   # (1, 2F)
    wp = jnp.concatenate([w2, phase], axis=0)                           # (2, 2F)

    if b < fused_small_batch:
        # Tiny-batch fast path: skip the pallas_call launch entirely and let
        # XLA fuse this with the downstream timestep MLP.
        return jnp.sin(t * wp[0:1, :] + wp[1:2, :]).astype(out_dtype)

    # --- Batch tile selection -------------------------------------------
    # 8-aligned cap (user-supplied batch_tile may not be a multiple of 8).
    batch_tile = max(8, 8 * ((int(batch_tile) + 7) // 8))
    if b <= 8:
        tb = b  # block == full dim is always legal
    else:
        # At least two balanced 8-aligned steps so "parallel" can shard the
        # batch across both v7x TensorCores (no-op on single-TC v5e/v6e).
        half_8aligned = 8 * pl.cdiv(pl.cdiv(b, 2), 8)
        tb = min(batch_tile, half_8aligned)
    grid = (pl.cdiv(b, tb),)

    out_itemsize = jnp.dtype(out_dtype).itemsize
    cost = pl.CostEstimate(
        flops=2 * b * two_f,                 # mul + add per output element
        transcendentals=b * two_f,           # one sin per output element
        bytes_accessed=4 * b + 4 * 2 * two_f + out_itemsize * b * two_f,
    )

    return pl.pallas_call(
        _rff_kernel,
        out_shape=jax.ShapeDtypeStruct((b, two_f), out_dtype),
        grid=grid,
        in_specs=[
            pl.BlockSpec((tb, 1), lambda i: (i, 0)),        # timestep rows
            pl.BlockSpec((2, two_f), lambda i: (0, 0)),     # resident weight+phase
        ],
        out_specs=pl.BlockSpec((tb, two_f), lambda i: (i, 0)),
        compiler_params=pltpu.CompilerParams(
            dimension_semantics=("parallel",),
        ),
        cost_estimate=cost,
    )(t, wp)


def _reference(t, weight_t):
    proj = jnp.asarray(t, jnp.float32) @ jnp.asarray(weight_t, jnp.float32)
    return jnp.concatenate([jnp.sin(proj), jnp.cos(proj)], axis=-1)


if __name__ == "__main__":
    key = jax.random.PRNGKey(0)
    k_t, k_w, k_t2 = jax.random.split(key, 3)

    # Equivalent of nn.init.normal_(weight, std=2*pi); PyTorch weight is
    # (192, 1), kept transposed here as (1, 192).
    weight_t = (
        jax.random.normal(k_w, (1, NUM_FEATURES), dtype=jnp.float32)
        * (2.0 * math.pi)
    )

    # Small batch of scalar timesteps, shape (B, 1) as nn.Linear(1, ...) expects.
    # B = 16 > 8 exercises the >=2-step "parallel" batch grid.
    batch = 16
    t = jax.random.uniform(k_t, (batch, 1), dtype=jnp.float32)

    out = random_fourier_features(t, weight_t)
    out = jax.block_until_ready(out)
    ref = _reference(t, weight_t)
    assert out.shape == (batch, 2 * NUM_FEATURES), out.shape
    assert jnp.allclose(out, ref, atol=1e-5, rtol=1e-5), "mismatch vs reference"

    # Ragged batch (not a multiple of the tile) + PyTorch-native weight layout.
    batch2 = 20
    t2 = jax.random.uniform(k_t2, (batch2, 1), dtype=jnp.float32)
    out2 = jax.block_until_ready(random_fourier_features(t2, weight_t.T))
    ref2 = _reference(t2, weight_t)
    assert out2.shape == (batch2, 2 * NUM_FEATURES), out2.shape
    assert jnp.allclose(out2, ref2, atol=1e-5, rtol=1e-5), "mismatch (ragged)"

    print("KERNEL_OK")
</pallas_src>

<mosaic_0001>
module attributes {stable_mosaic.version = 11 : i64} {
  func.func @_rff_kernel(%arg0: i32, %arg1: memref<8x1xf32, #tpu.memory_space<vmem>>, %arg2: memref<2x384xf32, #tpu.memory_space<vmem>>, %arg3: memref<8x384xf32, #tpu.memory_space<vmem>>) attributes {dimension_semantics = [#tpu.dimension_semantics<parallel>], iteration_bounds = array<i64: 2>, scalar_prefetch = 0 : i64, scratch_operands = 0 : i64, tpu.core_type = #tpu.core_type<tc>, window_params = [{transform_indices = @transform_0, window_bounds = array<i64: 8, 1>}, {pipeline_mode = #tpu.pipeline_mode<synchronous>, transform_indices = @transform_1, window_bounds = array<i64: 2, 384>}, {transform_indices = @transform_2, window_bounds = array<i64: 8, 384>}]} {
    %c0 = arith.constant 0 : index
    %c0_0 = arith.constant 0 : index
    %0 = vector.load %arg2[%c0, %c0_0] : memref<2x384xf32, #tpu.memory_space<vmem>>, vector<1x384xf32>
    %c1 = arith.constant 1 : index
    %c0_1 = arith.constant 0 : index
    %1 = vector.load %arg2[%c1, %c0_1] : memref<2x384xf32, #tpu.memory_space<vmem>>, vector<1x384xf32>
    %c0_2 = arith.constant 0 : index
    %c0_3 = arith.constant 0 : index
    %2 = vector.load %arg1[%c0_2, %c0_3] : memref<8x1xf32, #tpu.memory_space<vmem>>, vector<8x1xf32>
    %3 = vector.broadcast %2 : vector<8x1xf32> to vector<8x384xf32>
    %4 = vector.broadcast %0 : vector<1x384xf32> to vector<8x384xf32>
    %5 = arith.mulf %3, %4 : vector<8x384xf32>
    %6 = vector.broadcast %1 : vector<1x384xf32> to vector<8x384xf32>
    %7 = arith.addf %5, %6 : vector<8x384xf32>
    %8 = math.sin %7 : vector<8x384xf32>
    %c0_4 = arith.constant 0 : index
    %c0_5 = arith.constant 0 : index
    %9 = vector.load %arg3[%c0_4, %c0_5] : memref<8x384xf32, #tpu.memory_space<vmem>>, vector<8x384xf32>
    tpu.vector_store %arg3[%c0_4, %c0_5], %8 {strides = array<i32>} : memref<8x384xf32, #tpu.memory_space<vmem>>, vector<8x384xf32>,
    return
  }
  func.func @transform_0(%arg0: i32) -> (i32, i32) {
    %c0_i32 = arith.constant 0 : i32
    %c0_i32_0 = arith.constant 0 : i32
    return %arg0, %c0_i32 : i32, i32
  }
  func.func @transform_1(%arg0: i32) -> (i32, i32) {
    %c0_i32 = arith.constant 0 : i32
    %c0_i32_0 = arith.constant 0 : i32
    %c0_i32_1 = arith.constant 0 : i32
    return %c0_i32, %c0_i32_0 : i32, i32
  }
  func.func @transform_2(%arg0: i32) -> (i32, i32) {
    %c0_i32 = arith.constant 0 : i32
    %c0_i32_0 = arith.constant 0 : i32
    return %arg0, %c0_i32 : i32, i32
  }
}

</mosaic_0001>

<bundles_post_ra>
// kernel: tpu_custom_call.1
= control target key start
LH: loop header
LB: loop body
LE: loop exit
PB: predicated region body
PF: predicated region fallthrough
CT: control target
= control target key end

     0   :  { %7 = vsyncpa [#allocation3], 0  ;;  %s1045_s0 = inlined_call_operand.vmem [shape: f32[16,1], index: 0, kind: input, shape index: {}]   ;;  %s1046_s1 = inlined_call_operand.vmem [shape: f32[2,384], index: 1, kind: input, shape index: {}]   ;;  %s1047_s2 = inlined_call_operand.hbm [shape: f32[16,384], index: 2, kind: output, shape index: {}]  }
   0x1   :  { %9 = vsyncpa [#allocation3 + $0x1], 0  ;;  %s754_s9 = smov 0   ;;  %s756_s10 = smov 0  }
   0x2   :  { %s758_s11 = smov 0   ;;  %s760_s12 = smov 0  }
   0x3 LB: > { %s775_s13 = sadd.s32 4294967295, %s729_s12   ;;  %s575_s14 = sadd.s32 4294967294, %s729_s12   ;;  %s729_s12 = sphi %s760_s12, %s1057_s12   ;;  %s725_s11 = sphi %s758_s11, %s1056_s11   ;;  %s721_s10 = sphi %s756_s10, %s1055_s10   ;;  %s717_s9 = sphi %s754_s9, %s1054_s9  }
   0x4   : > { %s779_s15 = sadd.s32 1, %s729_s12   ;;  %s69_s16 = sadd.s32 1, %s725_s11 }
   0x5   : > { %s66_s17 = ssub.s32 %s729_s12, %s779_s15  ;;  %p79_p0 = scmp.ne.s32.totalorder %s725_s11, %s721_s10 }
   0x6   : > { %p67_p1 = scmp.eq.s32.totalorder %s66_s17, 0  ;;  %p80_p2 = scmp.eq.s32.totalorder %s775_s13, 1 }
   0x7   : > { %p85_p3 = scmp.ne.s32.totalorder %s721_s10, %s717_s9  ;;  %p86_p4 = scmp.eq.s32.totalorder %s575_s14, 1 }
   0x8   : > { %s790_s18 = scalar_select %p67_p1, %s725_s11, %s69_s16  }
   0x9   : > { %p792_p5 = por %p80_p2, %p79_p0  ;;  %p796_p6 = por %p86_p4, %p85_p3 }
   0xa   : > { %p578_p7 = scmp.ge.s32.totalorder %s729_s12, 1  ;;  %p114_p8 = scmp.lt.s32.totalorder %s729_s12, 3 }
   0xc   : > { %p115_p9 = pnand %p578_p7, %p114_p8 }
   0xd   : > { %p135_p10 = scmp.lt.s32.totalorder (!%p115_p9), %s775_s13, 1  ;;  %s132_s30 = sand.u32 (!%p115_p9), 1, %s721_s10  }
   0xe   : > { %118 = sbr.rel (%p115_p9) target bundleno = 274 (0x112), region = 28  ;;  %s738_s17 = smov (!%p115_p9), [#allocation2]  }
   0xf   : > { %s596_s3 = smul.u32 (!%p115_p9), 24, %s132_s30 }
  0x10   : > { %s609_s5 = smul.u32 (!%p115_p9), 384, %s775_s13 }
  0x11   : > { %s990_s4 = scalar_lea.vmem (!%p115_p9), [#allocation2], %s596_s3 }
  0x12   : > { %s516_s6 = sshll.u32 (!%p115_p9), %s990_s4, 4  ;;  %s1007_s14 = scalar_lea.hbm (!%p115_p9), %s1047_s2, %s609_s5  ;;  %s517_s6 = int_to_ptr.vmem [resolvable:$true] %s516_s6 }
  0x13   : > { %v731_v0 = vmov 0   ;;  %s136_s21 = scalar_select %p135_p10, %s775_s13, 1  ;;  %v149_v2 = vlaneseq  ;;  %v139_v7 = vld [vmem:[%s1046_s1] ss:$2 sm:$0x7] }
  0x14   : > { %656 = vset.pattern.permute.xlu0 %v731_v0  ;;  %v580_v8 = vld [vmem:[%s1046_s1 + $0x1] ss:$2 sm:$0x7]  ;;  %v732_v47 = vmov 683565275   ;;  %s502_s13 = scalar_lea.sflag [#allocation3], %s132_s30 }
  0x15   : > { %s579_s22 = sshll.u32 %s136_s21, 3  ;;  %v150_v3 = vshrl.u32 %v149_v2, 7  ;;  %v733_v51 = vmov 2475754826   ;;  %v734_v53 = vmov 2131351028  }
  0x16   : > { %s138_s25 = scalar_lea.vmem %s1045_s0, %s579_s22  ;;  %v735_v55 = vmov 2102212464   ;;  %v736_v57 = vmov 920167782   ;;  %v737_v0 = vmov 1326507024  }
  0x17   : > { %v142_v1 = vld [vmem:[%s138_s25] sm:$0xff]  ;;  %v151_v4 = vsub.s32 0, %v150_v3  ;;  %v155_v5 = vsub.s32 1, %v150_v3  ;;  %v159_v6 = vsub.s32 2, %v150_v3  ;;  %s669_s16 = scalar_lea.vmem %s517_s6, 384  ;;  %s673_s21 = sshll.u32 %s738_s17, 4  ;;  %s674_s21 = int_to_ptr.vmem [resolvable:$false] %s673_s21 }
  0x18   : > { %145 = vperm.xlu0 %656, %v142_v1   ;;  %p670_p11 = scmp.ne.s32.totalorder %s517_s6, %s669_s16  ;;  %s675_s22 = scalar_lea.vmem %s674_s21, 768 }
  0x19   : > { %v152_v9 = vrot.slane %v139_v7, %v151_v4  ;;  %v156_v10 = vrot.slane %v139_v7, %v155_v5  ;;  %v160_v11 = vrot.slane %v139_v7, %v159_v6  ;;  %v171_v12 = vrot.slane %v580_v8, %v151_v4  ;;  %p676_p0 = scmp.lt.s32.totalorder %s517_s6, %s674_s21  ;;  %p677_p1 = scmp.lt.s32.totalorder %s675_s22, %s669_s16 }
  0x1a   : > { %v175_v13 = vrot.slane %v580_v8, %v155_v5  ;;  %v179_v15 = vrot.slane %v580_v8, %v159_v6  ;;  %p671_p12 = pnand %p670_p11, %p792_p5 }
  0x1b   : > { %p678_p2 = por %p677_p1, %p676_p0 }
  0x1c   : > { %p672_p13 = pneg %p671_p12 }
  0x1e   : > { %p679_p3 = pnand %p678_p2, %p672_p13 }
  0x93   : > { %v146_v14 = vpop.permute.xlu0 %145 }
  0x94   : > { %v164_v16 = vmul.f32 %v152_v9, %v146_v14  ;;  %v165_v17 = vmul.f32 %v156_v10, %v146_v14  ;;  %v166_v18 = vmul.f32 %v160_v11, %v146_v14 }
  0x96   : > { %v813_v19 = vadd.f32 %v171_v12, %v164_v16  ;;  %v815_v20 = vadd.f32 %v175_v13, %v165_v17  ;;  %v817_v21 = vadd.f32 %v179_v15, %v166_v18 }
  0x98   : > { %v186_v22 = vand.u32 2147483647, %v813_v19  ;;  %v189_v23 = vand.u32 2139095040, %v813_v19  ;;  %v290_v24 = vand.u32 2147483647, %v815_v20  ;;  %v293_v25 = vand.u32 2139095040, %v815_v20 }
  0x99   : > { %v397_v30 = vand.u32 2139095040, %v817_v21 }
  0x9a   : > { %v190_v26 = vshrl.u32 %v189_v23, 23  ;;  %v193_v27 = vand.u32 8388607, %v186_v22  ;;  %v294_v28 = vshrl.u32 %v293_v25, 23  ;;  %v297_v29 = vand.u32 8388607, %v290_v24 }
  0x9b   : > { %v398_v33 = vshrl.u32 %v397_v30, 23 }
  0x9c   : > { %v581_v31 = vadd.s32 4294967169, %v190_v26  ;;  %v585_v32 = vadd.s32 4294967169, %v294_v28  ;;  %v194_v35 = vor.u32 8388608, %v193_v27  ;;  %v298_v36 = vor.u32 8388608, %v297_v29 }
  0x9d   : > { %v589_v38 = vadd.s32 4294967169, %v398_v33 }
  0x9e   : > { %v196_v34 = vadd.s32 1, %v581_v31  ;;  %v300_v37 = vadd.s32 1, %v585_v32  ;;  %v828_v43 = vshll.u32 %v194_v35, 8  ;;  %v830_v44 = vshll.u32 %v298_v36, 8 }
  0x9f   : > { %v832_v45 = vadd.s32 1, %v589_v38 }
  0xa0   : > { %vm197_vm0 = vcmp.gt.s32.totalorder %v196_v34, 0  ;;  %vm301_vm1 = vcmp.gt.s32.totalorder %v300_v37, 0 }
  0xa1   : > { %v198_v39 = vsel %vm197_vm0, %v196_v34, 0  ;;  %v302_v42 = vsel %vm301_vm1, %v300_v37, 0  ;;  %vm405_vm6 = vcmp.gt.s32.totalorder %v832_v45, 0 }
  0xa2   : > { %v199_v40 = vshrl.u32 %v198_v39, 5  ;;  %v200_v41 = vand.u32 31, %v198_v39  ;;  %v835_v49 = vshrl.u32 %v302_v42, 5  ;;  %v304_v50 = vand.u32 31, %v302_v42 }
  0xa4   : > { %v201_v46 = vsub.s32 32, %v200_v41  ;;  %v203_v48 = vshll.u32 %v732_v47, %v200_v41  ;;  %v206_v52 = vshll.u32 %v733_v51, %v200_v41  ;;  %v209_v54 = vshll.u32 %v734_v53, %v200_v41 }
  0xa5   : > { %v212_v56 = vshll.u32 %v735_v55, %v200_v41  ;;  %v215_v58 = vshll.u32 %v736_v57, %v200_v41  ;;  %vm218_vm2 = vcmp.lt.s32.totalorder %v199_v40, 1  ;;  %vm219_vm3 = vcmp.lt.s32.totalorder %v199_v40, 2 }
  0xa6   : > { %v204_v59 = vshrl.u32 %v733_v51, %v201_v46  ;;  %v207_v60 = vshrl.u32 %v734_v53, %v201_v46  ;;  %v210_v61 = vshrl.u32 %v735_v55, %v201_v46  ;;  %v202_v62 = vshrl.u32 %v732_v47, %v201_v46 }
  0xa7   : > { %v213_v63 = vshrl.u32 %v736_v57, %v201_v46  ;;  %v216_v1 = vshrl.u32 %v737_v0, %v201_v46  ;;  %v305_v5 = vsub.s32 32, %v304_v50  ;;  %vm220_vm4 = vcmp.lt.s32.totalorder %v199_v40, 3 }
  0xa8   : > { %v205_v2 = vor.u32 %v204_v59, %v203_v48  ;;  %v208_v3 = vor.u32 %v207_v60, %v206_v52  ;;  %v211_v4 = vor.u32 %v210_v61, %v209_v54  ;;  %vm221_vm5 = vcmp.lt.s32.totalorder %v199_v40, 4 }
  0xa9   : > { %v214_v6 = vor.u32 %v213_v63, %v212_v56  ;;  %v217_v7 = vor.u32 %v216_v1, %v215_v58  ;;  %v307_v15 = vshll.u32 %v732_v47, %v304_v50  ;;  %v308_v18 = vshrl.u32 %v733_v51, %v305_v5 }
  0xaa   : > { %v222_v8 = vsel %vm218_vm2, %v202_v62, %v205_v2  ;;  %v223_v9 = vsel %vm221_vm5, %v211_v4, 2102212464  ;;  %v226_v10 = vsel %vm218_vm2, %v205_v2, %v208_v3  ;;  %v230_v11 = vsel %vm218_vm2, %v208_v3, %v211_v4 }
  0xab   : > { %v224_v12 = vsel %vm220_vm4, %v208_v3, %v223_v9  ;;  %v227_v13 = vsel %vm221_vm5, %v214_v6, 920167782  ;;  %v231_v14 = vsel %vm221_vm5, %v217_v7, 1326507024  ;;  %v310_v23 = vshll.u32 %v733_v51, %v304_v50 }
  0xac   : > { %v228_v16 = vsel %vm220_vm4, %v211_v4, %v227_v13  ;;  %v232_v17 = vsel %vm220_vm4, %v214_v6, %v231_v14  ;;  %v225_v25 = vsel %vm219_vm3, %v222_v8, %v224_v12  ;;  %v311_v28 = vshrl.u32 %v734_v53, %v305_v5 }
  0xad   : > { %v229_v26 = vsel %vm219_vm3, %v226_v10, %v228_v16  ;;  %v233_v27 = vsel %vm219_vm3, %v230_v11, %v232_v17  ;;  %v309_v33 = vor.u32 %v308_v18, %v307_v15  ;;  %v313_v35 = vshll.u32 %v734_v53, %v304_v50 }
  0xae   : > { %v859_v29 = vmul.u32.u64.low %v828_v43, %v233_v27  ;;  %v860_v30 = vmul.u32.u64.high %v828_v43, %v233_v27, %v859_v29  ;;  %v863_v31 = vmul.u32.u64.low %v828_v43, %v229_v26  ;;  %v864_v32 = vmul.u32.u64.high %v828_v43, %v229_v26, %v863_v31 }
  0xaf   : > { %v312_v34 = vor.u32 %v311_v28, %v310_v23  ;;  %v314_v36 = vshrl.u32 %v735_v55, %v305_v5  ;;  %v306_v37 = vshrl.u32 %v732_v47, %v305_v5  ;;  %v316_v38 = vshll.u32 %v735_v55, %v304_v50 }
  0xb0   : > { %v317_v39 = vshrl.u32 %v736_v57, %v305_v5  ;;  %v320_v40 = vshrl.u32 %v737_v0, %v305_v5  ;;  %v241_v41 = vmul.u32 %v828_v43, %v225_v25  ;;  %v319_v46 = vshll.u32 %v736_v57, %v304_v50 }
  0xb1   : > { %v315_v42 = vor.u32 %v314_v36, %v313_v35  ;;  %vm322_vm7 = vcmp.lt.s32.totalorder %v835_v49, 1  ;;  %vm243_vm8 = vc.u32 %v860_v30, %v863_v31  ;;  %v244_v48 = vadd.s32 1, %v864_v32 }
  0xb2   : > { %v318_v52 = vor.u32 %v317_v39, %v316_v38  ;;  %vm323_vm9 = vcmp.lt.s32.totalorder %v835_v49, 2  ;;  %v321_v54 = vor.u32 %v320_v40, %v319_v46  ;;  %vm324_vm10 = vcmp.lt.s32.totalorder %v835_v49, 3 }
  0xb3   : > { %vm325_vm11 = vcmp.lt.s32.totalorder %v835_v49, 4  ;;  %v330_v56 = vsel %vm322_vm7, %v309_v33, %v312_v34  ;;  %v245_v43 = vsel %vm243_vm8, %v244_v48, %v864_v32  ;;  %v334_v59 = vsel %vm322_vm7, %v312_v34, %v315_v42 }
  0xb4   : > { %v327_v58 = vsel %vm325_vm11, %v315_v42, 2102212464  ;;  %v331_v50 = vsel %vm325_vm11, %v318_v52, 920167782  ;;  %v246_v60 = vadd.s32 %v245_v43, %v241_v41  ;;  %v326_v61 = vsel %vm322_vm7, %v306_v37, %v309_v33 }
  0xb5   : > { %v332_v62 = vsel %vm324_vm10, %v315_v42, %v331_v50  ;;  %v335_v63 = vsel %vm325_vm11, %v321_v54, 1326507024  ;;  %v328_v1 = vsel %vm324_vm10, %v312_v34, %v327_v58  ;;  %v406_v4 = vsel %vm405_vm6, %v832_v45, 0 }
  0xb6   : > { %v333_v2 = vsel %vm323_vm9, %v330_v56, %v332_v62  ;;  %v336_v3 = vsel %vm324_vm10, %v318_v52, %v335_v63  ;;  %v247_v5 = vadd.s32 536870912, %v246_v60  ;;  %v394_v11 = vand.u32 2147483647, %v817_v21 }
  0xb7   : > { %v337_v6 = vsel %vm323_vm9, %v334_v59, %v336_v3  ;;  %v891_v7 = vmul.u32.u64.low %v830_v44, %v333_v2  ;;  %v892_v8 = vmul.u32.u64.high %v830_v44, %v333_v2, %v891_v7  ;;  %v329_v45 = vsel %vm323_vm9, %v326_v61, %v328_v1 }
  0xb8   : > { %v896_v9 = vmul.u32.u64.low %v830_v44, %v337_v6  ;;  %v897_v10 = vmul.u32.u64.high %v830_v44, %v337_v6, %v896_v9  ;;  %v900_v12 = vshrl.u32 %v247_v5, 30  ;;  %v408_v13 = vand.u32 31, %v406_v4 }
  0xb9   : > { %v348_v15 = vadd.s32 1, %v892_v8  ;;  %v345_v17 = vmul.u32 %v830_v44, %v329_v45  ;;  %v401_v18 = vand.u32 8388607, %v394_v11  ;;  %v407_v44 = vshrl.u32 %v406_v4, 5 }
  0xba   : > { %v249_v14 = vshll.u32 %v900_v12, 30  ;;  %v409_v16 = vsub.s32 32, %v408_v13  ;;  %vm347_vm12 = vc.u32 %v897_v10, %v891_v7  ;;  %v411_v34 = vshll.u32 %v732_v47, %v408_v13 }
  0xbb   : > { %v349_v25 = vsel %vm347_vm12, %v348_v15, %v892_v8  ;;  %v402_v33 = vor.u32 8388608, %v401_v18  ;;  %v414_v36 = vshll.u32 %v733_v51, %v408_v13  ;;  %v417_v37 = vshll.u32 %v734_v53, %v408_v13 }
  0xbc   : > { %v250_v23 = vsub.s32 %v246_v60, %v249_v14  ;;  %v350_v26 = vadd.s32 %v349_v25, %v345_v17  ;;  %v412_v49 = vshrl.u32 %v733_v51, %v409_v16  ;;  %v415_v28 = vshrl.u32 %v734_v53, %v409_v16 }
  0xbd   : > { %v418_v29 = vshrl.u32 %v735_v55, %v409_v16  ;;  %v421_v38 = vshrl.u32 %v736_v57, %v409_v16  ;;  %v420_v41 = vshll.u32 %v735_v55, %v408_v13  ;;  %v424_v42 = vshrl.u32 %v737_v0, %v409_v16 }
  0xbe   : > { %v252_v27 = vsub.s32 0, %v250_v23  ;;  %v351_v32 = vadd.s32 536870912, %v350_v26  ;;  %v413_v40 = vor.u32 %v412_v49, %v411_v34  ;;  %v416_v48 = vor.u32 %v415_v28, %v414_v36 }
  0xbf   : > { %v419_v52 = vor.u32 %v418_v29, %v417_v37  ;;  %v423_v54 = vshll.u32 %v736_v57, %v408_v13  ;;  %v422_v43 = vor.u32 %v421_v38, %v420_v41  ;;  %vm429_vm13 = vcmp.lt.s32.totalorder %v407_v44, 4 }
  0xc0   : > { %v582_v35 = vmin.u32 %v252_v27, %v250_v23  ;;  %v919_v39 = vshrl.u32 %v351_v32, 30  ;;  %v442_v53 = vshll.u32 %v402_v33, 8  ;;  %vm426_vm14 = vcmp.lt.s32.totalorder %v407_v44, 1 }
  0xc1   : > { %v425_v58 = vor.u32 %v424_v42, %v423_v54  ;;  %vm428_vm15 = vcmp.lt.s32.totalorder %v407_v44, 3  ;;  %v435_v59 = vsel %vm429_vm13, %v422_v43, 920167782  ;;  %v242_v55 = vadd.s32 %v863_v31, %v860_v30 }
  0xc2   : > { %v254_v46 = vclz %v582_v35  ;;  %v353_v56 = vshll.u32 %v919_v39, 30  ;;  %v434_v0 = vsel %vm426_vm14, %v413_v40, %v416_v48  ;;  %v436_v57 = vsel %vm428_vm15, %v419_v52, %v435_v59 }
  0xc3   : > { %vm427_vm1 = vcmp.lt.s32.totalorder %v407_v44, 2  ;;  %v438_v62 = vsel %vm426_vm14, %v416_v48, %v419_v52  ;;  %v431_v2 = vsel %vm429_vm13, %v419_v52, 2102212464  ;;  %v439_v3 = vsel %vm429_vm13, %v425_v58, 1326507024 }
  0xc4   : > { %v583_v51 = vadd.s32 4294967294, %v254_v46  ;;  %v354_v50 = vsub.s32 %v350_v26, %v353_v56  ;;  %v410_v5 = vshrl.u32 %v732_v47, %v409_v16  ;;  %v437_v30 = vsel %vm427_vm1, %v434_v0, %v436_v57 }
  0xc5   : > { %v440_v31 = vsel %vm428_vm15, %v422_v43, %v439_v3  ;;  %v432_v15 = vsel %vm428_vm15, %v416_v48, %v431_v2  ;;  %v942_v16 = vmul.u32.u64.low %v442_v53, %v437_v30  ;;  %v943_v49 = vmul.u32.u64.high %v442_v53, %v437_v30, %v942_v16 }
  0xc6   : > { %vm584_vm0 = vcmp.lt.s32.totalorder %v583_v51, 0  ;;  %v356_v61 = vsub.s32 0, %v354_v50  ;;  %v441_v45 = vsel %vm427_vm1, %v438_v62, %v440_v31  ;;  %v430_v14 = vsel %vm426_vm14, %v410_v5, %v413_v40 }
  0xc7   : > { %v257_v60 = vsel %vm584_vm0, 0, %v583_v51  ;;  %v939_v25 = vmul.u32.u64.low %v442_v53, %v441_v45  ;;  %v940_v26 = vmul.u32.u64.high %v442_v53, %v441_v45, %v939_v25  ;;  %v433_v27 = vsel %vm427_vm1, %v430_v14, %v432_v15 }
  0xc8   : > { %v258_v63 = vsub.s32 32, %v257_v60  ;;  %v262_v1 = vsub.s32 4294967266, %v257_v60  ;;  %v586_v4 = vmin.u32 %v356_v61, %v354_v50  ;;  %v259_v6 = vshll.u32 %v250_v23, %v257_v60 }
  0xc9   : > { %vm451_vm3 = vc.u32 %v940_v26, %v942_v16  ;;  %v346_v33 = vadd.s32 %v891_v7, %v897_v10  ;;  %v452_v36 = vadd.s32 1, %v943_v49  ;;  %v449_v38 = vmul.u32 %v442_v53, %v433_v27 }
  0xca   : > { %v260_v8 = vshrl.u32 %v242_v55, %v258_v63  ;;  %v263_v9 = vadd.s32 127, %v262_v1  ;;  %v358_v13 = vclz %v586_v4  ;;  %v272_v48 = vsub.s32 4, %v900_v12 }
  0xcb   : > { %v453_v44 = vsel %vm451_vm3, %v452_v36, %v943_v49  ;;  %vm188_vm4 = vcmp.lt.s32.totalorder %v813_v19, 0  ;;  %vm957_vm5 = vcmp.le.f32.partialorder %v186_v22, 0.7853982  ;;  %v376_v62 = vsub.s32 4, %v919_v39 }
  0xcc   : > { %v261_v17 = vor.u32 %v260_v8, %v259_v6  ;;  %v264_v18 = vshll.u32 %v263_v9, 23  ;;  %v587_v47 = vadd.s32 4294967294, %v358_v13  ;;  %v454_v52 = vadd.s32 %v453_v44, %v449_v38 }
  0xcd   : > { %v273_v53 = vsel %vm188_vm4, %v272_v48, %v900_v12  ;;  %vm292_vm6 = vcmp.lt.s32.totalorder %v815_v20, 0  ;;  %vm974_vm7 = vcmp.le.f32.partialorder %v290_v24, 0.7853982  ;;  %vm278_vm11 = vweird.f32 %v813_v19 }
  0xce   : > { %v265_v23 = vor.u32 4788187, %v264_v18  ;;  %vm588_vm2 = vcmp.lt.s32.totalorder %v587_v47, 0  ;;  %v268_v29 = vcvt.s32.f32 %v261_v17  ;;  %v455_v43 = vadd.s32 536870912, %v454_v52 }
  0xcf   : > { %v361_v32 = vsel %vm588_vm2, 0, %v587_v47  ;;  %v275_v0 = vsel %vm957_vm5, 0, %v273_v53  ;;  %v377_v5 = vsel %vm292_vm6, %v376_v62, %v919_v39  ;;  %v450_v17 = vadd.s32 %v942_v16, %v940_v26 }
  0xd0   : > { %v266_v28 = vand.u32 2147483647, %v265_v23  ;;  %v362_v34 = vsub.s32 32, %v361_v32  ;;  %v366_v35 = vsub.s32 4294967266, %v361_v32  ;;  %v363_v40 = vshll.u32 %v354_v50, %v361_v32 }
  0xd1   : > { %v965_v50 = vshrl.u32 %v455_v43, 30  ;;  %v279_v63 = vadd.s32 3, %v275_v0  ;;  %v379_v6 = vsel %vm974_vm7, 0, %v377_v5  ;;  %vm382_vm0 = vweird.f32 %v815_v20 }
  0xd2   : > { %v269_v37 = vmul.f32 %v268_v29, %v266_v28  ;;  %v364_v41 = vshrl.u32 %v346_v33, %v362_v34  ;;  %v367_v42 = vadd.s32 127, %v366_v35  ;;  %v383_v14 = vadd.s32 3, %v379_v6 }
  0xd3   : > { %v457_v22 = vshll.u32 %v965_v50, 30  ;;  %v280_v30 = vand.u32 3, %v279_v63  ;;  %vm396_vm1 = vcmp.lt.s32.totalorder %v817_v21, 0  ;;  %vm395_vm2 = vcmp.le.f32.partialorder %v394_v11, 0.7853982 }
  0xd4   : > { %v270_v46 = vxor.u32 2147483648, %v269_v37  ;;  %v365_v54 = vor.u32 %v364_v41, %v363_v40  ;;  %v368_v56 = vshll.u32 %v367_v42, 23  ;;  %v384_v32 = vand.u32 3, %v383_v14 }
  0xd5   : > { %v458_v60 = vsub.s32 %v454_v52, %v457_v22  ;;  %vm282_vm8 = vcmp.eq.s32.totalorder %v280_v30, 0  ;;  %vm285_vm10 = vcmp.eq.s32.totalorder %v280_v30, 2  ;;  %vm281_vm12 = vcmp.lt.s32.totalorder %v280_v30, 2 }
  0xd6   : > { %v271_v10 = vsel %vm188_vm4, %v270_v46, %v269_v37  ;;  %v369_v58 = vor.u32 4788187, %v368_v56  ;;  %v372_v55 = vcvt.s32.f32 %v365_v54  ;;  %vm389_vm13 = vcmp.eq.s32.totalorder %v384_v32, 2 }
  0xd7   : > { %v274_v51 = vsel %vm957_vm5, %v813_v19, %v271_v10  ;;  %v460_v12 = vsub.s32 0, %v458_v60  ;;  %vm386_vm14 = vcmp.eq.s32.totalorder %v384_v32, 0  ;;  %vm385_vm15 = vcmp.lt.s32.totalorder %v384_v32, 2 }
  0xd8   : > { %657 = vcosq.f32 %v274_v51  ;;  %v370_v59 = vand.u32 2147483647, %v369_v58  ;;  %v480_v52 = vsub.s32 4, %v965_v50 }
  0xd9   : > { %659 = vsinq.f32 %v274_v51  ;;  %v590_v4 = vmin.u32 %v460_v12, %v458_v60 }
  0xda   : > { %v373_v57 = vmul.f32 %v372_v55, %v370_v59  ;;  %v481_v7 = vsel %vm396_vm1, %v480_v52, %v965_v50 }
  0xdb   : > { %v462_v31 = vclz %v590_v4 }
  0xdc   : > { %v374_v61 = vxor.u32 2147483648, %v373_v57 }
  0xdd   : > { %v591_v24 = vadd.s32 4294967294, %v462_v31 }
  0xde   : > { %v375_v2 = vsel %vm292_vm6, %v374_v61, %v373_v57  ;;  %vm486_vm6 = vweird.f32 %v817_v21 }
  0xdf   : > { %v378_v3 = vsel %vm974_vm7, %v815_v20, %v375_v2  ;;  %vm592_vm9 = vcmp.lt.s32.totalorder %v591_v24, 0  ;;  %v483_v20 = vsel %vm395_vm2, 0, %v481_v7 }
  0xe0   : > { %661 = vcosq.f32 %v378_v3  ;;  %v465_v39 = vsel %vm592_vm9, 0, %v591_v24  ;;  %v487_v10 = vadd.s32 3, %v483_v20 }
  0xe1   : > { %663 = vsinq.f32 %v378_v3  ;;  %v466_v18 = vsub.s32 32, %v465_v39  ;;  %v470_v25 = vsub.s32 4294967266, %v465_v39  ;;  %v467_v23 = vshll.u32 %v458_v60, %v465_v39 }
  0xe2   : > { %v488_v43 = vand.u32 3, %v487_v10 }
  0xe3   : > { %v468_v27 = vshrl.u32 %v450_v17, %v466_v18  ;;  %v471_v28 = vadd.s32 127, %v470_v25 }
  0xe4   : > { %vm493_vm3 = vcmp.eq.s32.totalorder %v488_v43, 2  ;;  %vm490_vm4 = vcmp.eq.s32.totalorder %v488_v43, 0  ;;  %vm489_vm5 = vcmp.lt.s32.totalorder %v488_v43, 2 }
  0xe5   : > { %v658_v8 = vpop.eup %657  ;;  %v469_v33 = vor.u32 %v468_v27, %v467_v23  ;;  %v472_v34 = vshll.u32 %v471_v28, 23 }
  0xe6   : > { %v660_v9 = vpop.eup %659  ;;  %v286_v45 = vxor.u32 2147483648, %v658_v8 }
  0xe7   : > { %v283_v13 = vxor.u32 2147483648, %v660_v9  ;;  %v473_v26 = vor.u32 4788187, %v472_v34  ;;  %v476_v38 = vcvt.s32.f32 %v469_v33 }
  0xe8   : > { %v287_v15 = vsel %vm285_vm10, %v286_v45, %v660_v9 }
  0xe9   : > { %v284_v47 = vsel %vm282_vm8, %v658_v8, %v283_v13  ;;  %v474_v37 = vand.u32 2147483647, %v473_v26 }
  0xea   : > { %v288_v49 = vsel %vm281_vm12, %v284_v47, %v287_v15 }
  0xeb   : > { %v289_v29 = vsel %vm278_vm11, nan, %v288_v49  ;;  %v477_v42 = vmul.f32 %v476_v38, %v474_v37 }
  0xec   : > { %498 = vst [vmem:[%s990_s4] sm:$0xff] %v289_v29 }
  0xed   : > { %v662_v35 = vpop.eup %661  ;;  %v478_v48 = vxor.u32 2147483648, %v477_v42 }
  0xee   : > { %v664_v16 = vpop.eup %663  ;;  %v390_v36 = vxor.u32 2147483648, %v662_v35 }
  0xef   : > { %v387_v19 = vxor.u32 2147483648, %v664_v16  ;;  %v479_v54 = vsel %vm396_vm1, %v478_v48, %v477_v42 }
  0xf0   : > { %v391_v40 = vsel %vm389_vm13, %v390_v36, %v664_v16  ;;  %v482_v56 = vsel %vm395_vm2, %v817_v21, %v479_v54 }
  0xf1   : > { %v388_v41 = vsel %vm386_vm14, %v662_v35, %v387_v19  ;;  %665 = vcosq.f32 %v482_v56 }
  0xf2   : > { %v392_v44 = vsel %vm385_vm15, %v388_v41, %v391_v40  ;;  %667 = vsinq.f32 %v482_v56 }
  0xf3   : > { %v393_v46 = vsel %vm382_vm0, nan, %v392_v44 }
  0xf4   : > { %499 = vst [vmem:[%s990_s4 + $0x8] sm:$0xff] %v393_v46 }
  0xfe   : > { %v666_v51 = vpop.eup %665 }
  0xff   : > { %v668_v58 = vpop.eup %667  ;;  %v494_v53 = vxor.u32 2147483648, %v666_v51 }
 0x100   : > { %v491_v59 = vxor.u32 2147483648, %v668_v58 }
 0x101   : > { %v495_v11 = vsel %vm493_vm3, %v494_v53, %v668_v58 }
 0x102   : > { %v492_v55 = vsel %vm490_vm4, %v666_v51, %v491_v59 }
 0x103   : > { %v496_v50 = vsel %vm489_vm5, %v492_v55, %v495_v11 }
 0x104   : > { %v497_v22 = vsel %vm486_vm6, nan, %v496_v50 }
 0x105   : > { %500 = vst [vmem:[%s990_s4 + $0x10] sm:$0xff] %v497_v22 }
 0x106   : > { %682 = shalt.err (!%p679_p3)
}
 0x107   : > { %s683_s23 = scalar_lea.hbm %s1007_s14, 384  ;;  %s687_s26 = scalar_lea.hbm %s1047_s2, 768 }
 0x108   : > { %p684_p4 = scmp.ne.s32.totalorder %s1007_s14, %s683_s23  ;;  %p688_p9 = scmp.lt.s32.totalorder %s1007_s14, %s1047_s2 }
 0x109   : > { %p689_p10 = scmp.lt.s32.totalorder %s687_s26, %s683_s23 }
 0x10a   : > { %p685_p7 = pnand %p684_p4, %p792_p5 }
 0x10b   : > { %p690_p11 = por %p689_p10, %p688_p9 }
 0x10c   : > { %p686_p8 = pneg %p685_p7 }
 0x10e   : > { %p691_p12 = pnand %p690_p11, %p686_p8 }
 0x110   : > { %694 = shalt.err (!%p691_p12)
}
 0x111   : > { %610 = dma.vmem_to_hbm [thread:$0]  (%p792_p5), %s517_s6, 384, %s1007_s14, %s502_s13  }
 0x112 PF: > { %p616_p13 = scmp.ge.s32.totalorder %s729_s12, 2  ;;  %s528_s29 = sand.u32 1, %s717_s9  }
 0x113   : > { %s529_s30 = scalar_lea.sflag [#allocation3], %s528_s29 }
 0x114   : > { %p613_p0 = pnand %p616_p13, %p796_p6 }
 0x116   : > { %p614_p1 = pneg %p613_p0 }
 0x118   : > { %712 = dma.done.wait (%p614_p1), %s529_s30, 384  }
 0x119   : > { %714 = vsyncadd (%p614_p1), %s529_s30, 4294966912  ;;  %p12_p2 = scmp.ge.s32.totalorder %s779_s15, 4   ;;  %s1054_s9 = smov %s721_s10 }
 0x11a   : > { %s1055_s10 = smov %s725_s11  ;;  %s1056_s11 = smov %s790_s18 }
 0x11b   : > { %s1057_s12 = smov %s779_s15  ;;  %14 = sbr.rel (!%p12_p2) target bundleno = 3 (0x3), region = 64 }
 0x120   :  { %534 = vsyncpa [#allocation3], 1 }
 0x121   :  { %536 = vsyncpa [#allocation3 + $0x1], 1 }

</bundles_post_ra>
